<compile_context>
chip_gen: v5e
topology: v5e:2x2
jax: 0.10.0
libtpu: 0.0.40
codegen_flags: <defaults>
</compile_context>

<pallas_src>
import jax
import jax.numpy as jnp
from jax.experimental import pallas as pl
from jax.experimental.pallas import tpu as pltpu


def _sigmoid(x):
    # Numerically stable sigmoid; tanh lowers to the EUP slot (free alongside VPU).
    return 0.5 * (jnp.tanh(0.5 * x) + 1.0)


# --------------------------------------------------------------------------
# Pallas kernels
# --------------------------------------------------------------------------

def _tracker_kernel(emb_ref, wp_ref, bias_ref, scale_ref, out_ref):
    """Synthetic PointTracker stand-in — ALL frames in one grid step.

    emb_ref  : (N, D)     per-track embedding
    wp_ref   : (D, 3)     projection to (x, y, vis)
    bias_ref : (T, 1, 3)  per-frame phase + frame-mean bias (precomputed)
    scale_ref: (1, 1, 3)  [w-1, h-1, 1]
    out_ref  : (T, N, 3)  tracks in pixel coordinates + visibility
    """
    raw = jnp.dot(emb_ref[...], wp_ref[...],
                  preferred_element_type=jnp.float32)          # (N, 3), runs once
    logits = raw[None, :, :] + bias_ref[...]                   # (T, N, 3)
    out_ref[...] = _sigmoid(logits) * scale_ref[...]


def _src_feats_kernel(src_ref, w1s_ref, b1_ref, out_ref):
    """t-invariant source-frame first-layer contribution (pre-activation).

    src_ref : (C, TILE) channel-first pixels
    w1s_ref : (HID, C),  b1_ref: (HID, 1)
    out_ref : (HID, TILE)
    """
    out_ref[...] = (jnp.dot(w1s_ref[...], src_ref[...],
                            preferred_element_type=jnp.float32)
                    + b1_ref[...])


def _refiner_kernel(tgt_ref, hid_src_ref, w1t_ref, w2_ref, bias_ref,
                    grid_ref, out_ref):
    """Fused refiner MLP + compose(flow+grid) + sigmoid(alpha), lane-dense.

    tgt_ref     : (1, C, TILE)  target-frame pixels (channel-first)
    hid_src_ref : (HID, TILE)   precomputed src contribution (includes b1)
    w1t_ref     : (HID, C)
    w2_ref      : (3, HID)
    bias_ref    : (1, 3, 1)     b2 + scaled per-frame track displacement
    grid_ref    : (3, TILE)     [grid_x(px), grid_y(px), 0]
    out_ref     : (1, 3, TILE)  [flow_x+grid_x, flow_y+grid_y, sigmoid(alpha)]
    """
    hid = jnp.maximum(
        jnp.dot(w1t_ref[...], tgt_ref[0], preferred_element_type=jnp.float32)
        + hid_src_ref[...], 0.0)                               # (HID, TILE)
    y = (jnp.dot(w2_ref[...], hid, preferred_element_type=jnp.float32)
         + bias_ref[0])                                        # (3, TILE)
    ch = jax.lax.broadcasted_iota(jnp.int32, y.shape, 0)
    out_ref[0] = jnp.where(ch == 2, _sigmoid(y), y + grid_ref[...])


# --------------------------------------------------------------------------
# Pallas wrappers
# --------------------------------------------------------------------------

def _run_tracker(emb, wp, bias, scale):
    # bias: (T, 1, 3), scale: (1, 1, 3) -> tracks (T, N, 3) in pixel coords.
    T = bias.shape[0]
    N = emb.shape[0]
    return pl.pallas_call(
        _tracker_kernel,
        out_shape=jax.ShapeDtypeStruct((T, N, 3), jnp.float32),
        grid=(1,),
        in_specs=[
            pl.BlockSpec(emb.shape, lambda i: (0, 0)),
            pl.BlockSpec(wp.shape, lambda i: (0, 0)),
            pl.BlockSpec(bias.shape, lambda i: (0, 0, 0)),
            pl.BlockSpec(scale.shape, lambda i: (0, 0, 0)),
        ],
        out_specs=pl.BlockSpec((T, N, 3), lambda i: (0, 0, 0)),
        compiler_params=pltpu.CompilerParams(dimension_semantics=("parallel",)),
    )(emb, wp, bias, scale)


def _pick_pixel_tile(HW, max_tile=2048):
    # Largest multiple of 128 that divides H*W, capped at max_tile (VMEM-safe
    # on v7x's smaller 64 MiB VMEM as well as v5e/v6e).
    assert HW % 128 == 0
    tile = 128
    for cand in range(128, min(HW, max_tile) + 1, 128):
        if HW % cand == 0:
            tile = cand
    return tile


def _run_refiner(src_frame, tgt_frames, src_points, tgt_points, params, H, W,
                 grid3=None):
    """Synthetic OpticalFlow ('flow_with_tracks_init') stand-in.

    src_frame  : (C, H, W)
    tgt_frames : (Tt, C, H, W)
    src_points : (N, 3)     normalized source track init
    tgt_points : (Tt, N, 3) normalized target track init
    grid3      : (3, H*W) or None (None -> zeros: raw flow/alpha, no grid add)

    Returns (Tt, 3, H*W) channel-first:
      channel 0/1 = flow_x/flow_y (pixels) + grid, channel 2 = sigmoid(alpha).
    """
    w1_src, w1_tgt, b1, w2, b2 = params
    Tt, C = tgt_frames.shape[0], tgt_frames.shape[1]
    HID = w1_src.shape[0]
    HW = H * W
    tile = _pick_pixel_tile(HW)
    n_tiles = HW // tile

    # Channel-first pixel layout is a pure reshape (no transpose pass).
    src_cf = src_frame.reshape(C, HW)
    tgt_cf = tgt_frames.reshape(Tt, C, HW)
    if grid3 is None:
        grid3 = jnp.zeros((3, HW), jnp.float32)

    # t-invariant source contribution to the first layer (includes b1).
    hid_src = pl.pallas_call(
        _src_feats_kernel,
        out_shape=jax.ShapeDtypeStruct((HID, HW), jnp.float32),
        grid=(n_tiles,),
        in_specs=[
            pl.BlockSpec((C, tile), lambda p: (0, p)),
            pl.BlockSpec((HID, C), lambda p: (0, 0)),
            pl.BlockSpec((HID, 1), lambda p: (0, 0)),
        ],
        out_specs=pl.BlockSpec((HID, tile), lambda p: (0, p)),
        compiler_params=pltpu.CompilerParams(dimension_semantics=("parallel",)),
    )(src_cf, w1_src, b1)

    # Per-frame track-init displacement bias, hoisted out of the pixel grid.
    disp = jnp.mean(tgt_points - src_points[None], axis=1)               # (Tt, 3)
    disp = disp * jnp.array([W - 1.0, H - 1.0, 1.0], jnp.float32)[None]
    bias = b2[None] + disp[:, :, None]                                   # (Tt, 3, 1)

    out = pl.pallas_call(
        _refiner_kernel,
        out_shape=jax.ShapeDtypeStruct((Tt, 3, HW), jnp.float32),
        grid=(Tt, n_tiles),
        in_specs=[
            pl.BlockSpec((1, C, tile), lambda t, p: (t, 0, p)),
            pl.BlockSpec((HID, tile), lambda t, p: (0, p)),
            pl.BlockSpec((HID, C), lambda t, p: (0, 0)),
            pl.BlockSpec((3, HID), lambda t, p: (0, 0)),
            pl.BlockSpec((1, 3, 1), lambda t, p: (t, 0, 0)),
            pl.BlockSpec((3, tile), lambda t, p: (0, p)),
        ],
        out_specs=pl.BlockSpec((1, 3, tile), lambda t, p: (t, 0, p)),
        compiler_params=pltpu.CompilerParams(
            dimension_semantics=("parallel", "parallel")),
    )(tgt_cf, hid_src, w1_tgt, w2, bias, grid3)
    return out


def _get_grid_pix(H, W):
    # Pixel-unit coordinate grid, channel-first (2, H*W): [x, y].
    gy = jax.lax.broadcasted_iota(jnp.float32, (H, W), 0)
    gx = jax.lax.broadcasted_iota(jnp.float32, (H, W), 1)
    return jnp.stack([gx, gy], axis=0).reshape(2, H * W)


# --------------------------------------------------------------------------
# Module
# --------------------------------------------------------------------------

class DenseOpticalTrackerPallas:
    """Pallas port of DenseOpticalTracker's forward composition."""

    def __init__(self, height=16, width=16, channels=4, num_tracks=32,
                 emb_dim=16, hidden=32, seed=0):
        self.resolution = [height, width]
        self.channels = channels
        # TODO(synk): PointTracker (CoTracker) and OpticalFlow (RAFT) checkpointed
        # sub-networks are replaced by small deterministic synthetic stand-ins.
        k1, k2, k3, k4, k5, k6 = jax.random.split(jax.random.PRNGKey(seed), 6)
        self.emb = 0.5 * jax.random.normal(k1, (num_tracks, emb_dim), jnp.float32)
        self.wp = 0.5 * jax.random.normal(k2, (emb_dim, 3), jnp.float32)
        # Refiner weights, stored channel-first. w1 is split into src/tgt halves
        # so the source contribution can be computed once and reused.
        w1 = 0.3 * jax.random.normal(k3, (2 * channels, hidden), jnp.float32)
        self.w1_src = jnp.transpose(w1[:channels])            # (HID, C)
        self.w1_tgt = jnp.transpose(w1[channels:])            # (HID, C)
        self.b1 = 0.1 * jax.random.normal(k4, (hidden, 1), jnp.float32)
        self.w2 = 0.3 * jax.random.normal(k5, (3, hidden), jnp.float32)
        self.b2 = 0.1 * jax.random.normal(k6, (3, 1), jnp.float32)

    def _refiner_params(self):
        return (self.w1_src, self.w1_tgt, self.b1, self.w2, self.b2)

    # --- synthetic point tracker ('tracks_at_motion_boundaries') -----------
    def _point_tracker_tracks(self, video):
        B, T, C, h, w = video.shape
        assert B == 1
        # Per-frame mean: one reduction pass over the whole video (no per-frame
        # whole-frame DMA inside the tracker kernel).
        fmean = jnp.mean(video[0].reshape(T, -1), axis=1)               # (T,)
        phase = 0.1 * jnp.sin(jnp.arange(T, dtype=jnp.float32))         # (T,)
        bias = jnp.repeat((phase + fmean)[:, None, None], 3, axis=2)    # (T, 1, 3)
        scale = jnp.array([w - 1.0, h - 1.0, 1.0],
                          jnp.float32).reshape(1, 1, 3)
        tracks = _run_tracker(self.emb, self.wp, bias, scale)           # (T, N, 3)
        return tracks[None]                                  # (1, T, N, 3), pixel coords

    @staticmethod
    def _normalize_tracks(init, h, w):
        return jnp.stack([init[..., 0] / (w - 1),
                          init[..., 1] / (h - 1),
                          init[..., 2]], axis=-1)

    # --- modes --------------------------------------------------------------
    def get_tracks_from_first_to_every_other_frame(self, data):
        video = data['video']
        B, T, C, h, w = video.shape
        assert B == 1
        H, W = self.resolution
        # TODO(synk): F.interpolate resize path (h,w) -> (H,W) not implemented.
        assert (h, w) == (H, W)

        init = self._point_tracker_tracks(video)              # (1, T, N, 3)
        init = self._normalize_tracks(init, h, w)

        grid_pix = _get_grid_pix(H, W)                         # (2, H*W), pixels
        grid3 = jnp.concatenate(
            [grid_pix, jnp.zeros((1, H * W), jnp.float32)], axis=0)     # (3, H*W)

        # src_step == tgt_step: flow = 0, alpha = 1  ->  tracks = [grid, 1]
        grid_hw = jnp.transpose(grid_pix.reshape(2, H, W), (1, 2, 0))   # (H, W, 2)
        track0 = jnp.concatenate(
            [grid_hw, jnp.ones((H, W, 1), jnp.float32)], axis=-1)[None]  # (1, H, W, 3)

        if T > 1:
            src_points = init[0, 0]                            # (N, 3)
            src_frame = video[0, 0]                            # (C, H, W)
            tgt_frames = video[0, 1:]                          # (T-1, C, H, W)
            tgt_points = init[0, 1:]                           # (T-1, N, 3)
            out_cf = _run_refiner(src_frame, tgt_frames, src_points, tgt_points,
                                  self._refiner_params(), H, W, grid3=grid3)
            tracks_rest = jnp.transpose(
                out_cf.reshape(T - 1, 3, H, W), (0, 2, 3, 1))  # (T-1, H, W, 3)
            tracks = jnp.concatenate([track0, tracks_rest], axis=0)
        else:
            tracks = track0
        return {'tracks': tracks[None]}                        # (1, T, H, W, 3)

    def get_flow_from_last_to_first_frame(self, data):
        video = data['video']
        B, T, C, h, w = video.shape
        assert B == 1
        H, W = self.resolution
        assert (h, w) == (H, W)

        init = self._point_tracker_tracks(video)
        init = self._normalize_tracks(init, h, w)

        src_frame = video[0, -1]
        tgt_frames = video[0, 0][None]                         # (1, C, H, W)
        src_points = init[0, -1]
        tgt_points = init[0, 0][None]                          # (1, N, 3)

        # grid3=None -> zeros: channels 0/1 are raw pixel flow, channel 2 alpha.
        out_cf = _run_refiner(src_frame, tgt_frames, src_points, tgt_points,
                              self._refiner_params(), H, W, grid3=None)
        out = jnp.transpose(out_cf.reshape(1, 3, H, W), (0, 2, 3, 1))   # (1, H, W, 3)
        return {'flow': out[..., :2],                          # (1, H, W, 2)
                'alpha': out[..., 2],                          # (1, H, W)
                'src_points': init[:, -1],
                'tgt_points': init[:, 0]}

    def __call__(self, data, mode, **kwargs):
        if mode == 'flow_from_last_to_first_frame':
            return self.get_flow_from_last_to_first_frame(data)
        if mode == 'tracks_for_queries':
            # TODO(synk): bilinear grid_sample readout of query tracks not implemented.
            raise NotImplementedError("tracks_for_queries not implemented")
        if mode == 'tracks_from_first_to_every_other_frame':
            return self.get_tracks_from_first_to_every_other_frame(data)
        raise ValueError(f'Unknown mode {mode}')


# --------------------------------------------------------------------------
# Example run
# --------------------------------------------------------------------------

if __name__ == "__main__":
    key = jax.random.PRNGKey(0)
    B, T, C, H, W = 1, 4, 4, 16, 16
    video = jax.random.uniform(key, (B, T, C, H, W), dtype=jnp.float32)

    model = DenseOpticalTrackerPallas(height=H, width=W, channels=C,
                                      num_tracks=32, emb_dim=16, hidden=32)

    out_tracks = model({'video': video},
                       mode='tracks_from_first_to_every_other_frame')
    out_flow = model({'video': video}, mode='flow_from_last_to_first_frame')

    jax.block_until_ready(out_tracks['tracks'])
    jax.block_until_ready(out_flow['flow'])

    assert out_tracks['tracks'].shape == (B, T, H, W, 3)
    assert out_flow['flow'].shape == (1, H, W, 2)
    assert out_flow['alpha'].shape == (1, H, W)

    print("KERNEL_OK")
</pallas_src>

<mosaic_0001>
module attributes {stable_mosaic.version = 11 : i64} {
  func.func @_tracker_kernel(%arg0: i32, %arg1: memref<32x16xf32, #tpu.memory_space<vmem>>, %arg2: memref<16x3xf32, #tpu.memory_space<vmem>>, %arg3: memref<4x1x3xf32, #tpu.memory_space<vmem>>, %arg4: memref<1x1x3xf32, #tpu.memory_space<vmem>>, %arg5: memref<4x32x3xf32, #tpu.memory_space<vmem>>) attributes {dimension_semantics = [#tpu.dimension_semantics<parallel>], iteration_bounds = array<i64: 1>, scalar_prefetch = 0 : i64, scratch_operands = 0 : i64, tpu.core_type = #tpu.core_type<tc>, window_params = [{pipeline_mode = #tpu.pipeline_mode<synchronous>, transform_indices = @transform_0, window_bounds = array<i64: 32, 16>}, {pipeline_mode = #tpu.pipeline_mode<synchronous>, transform_indices = @transform_1, window_bounds = array<i64: 16, 3>}, {pipeline_mode = #tpu.pipeline_mode<synchronous>, transform_indices = @transform_2, window_bounds = array<i64: 4, 1, 3>}, {pipeline_mode = #tpu.pipeline_mode<synchronous>, transform_indices = @transform_3, window_bounds = array<i64: 1, 1, 3>}, {pipeline_mode = #tpu.pipeline_mode<synchronous>, transform_indices = @transform_4, window_bounds = array<i64: 4, 32, 3>}]} {
    %c0 = arith.constant 0 : index
    %c0_0 = arith.constant 0 : index
    %0 = vector.load %arg1[%c0, %c0_0] : memref<32x16xf32, #tpu.memory_space<vmem>>, vector<32x16xf32>
    %c0_1 = arith.constant 0 : index
    %c0_2 = arith.constant 0 : index
    %1 = vector.load %arg2[%c0_1, %c0_2] : memref<16x3xf32, #tpu.memory_space<vmem>>, vector<16x3xf32>
    %cst = arith.constant dense<0.000000e+00> : vector<32x3xf32>
    %2 = tpu.matmul %0, %1, %cst {dimension_numbers = #tpu.dot_dimension_numbers<[1], [0], [0], [1], [0, 0, 1, 1], [], []>} : vector<32x16xf32>, vector<16x3xf32>, vector<32x3xf32> -> vector<32x3xf32>
    %3 = vector.shape_cast %2 : vector<32x3xf32> to vector<1x32x3xf32>
    %c0_3 = arith.constant 0 : index
    %c0_4 = arith.constant 0 : index
    %c0_5 = arith.constant 0 : index
    %4 = vector.load %arg3[%c0_3, %c0_4, %c0_5] : memref<4x1x3xf32, #tpu.memory_space<vmem>>, vector<4x1x3xf32>
    %5 = vector.broadcast %3 : vector<1x32x3xf32> to vector<4x32x3xf32>
    %6 = vector.broadcast %4 : vector<4x1x3xf32> to vector<4x32x3xf32>
    %7 = arith.addf %5, %6 : vector<4x32x3xf32>
    %cst_6 = arith.constant 5.000000e-01 : f32
    %8 = vector.broadcast %cst_6 : f32 to vector<4x32x3xf32>
    %9 = arith.mulf %8, %7 : vector<4x32x3xf32>
    %10 = math.tanh %9 : vector<4x32x3xf32>
    %cst_7 = arith.constant 1.000000e+00 : f32
    %11 = vector.broadcast %cst_7 : f32 to vector<4x32x3xf32>
    %12 = arith.addf %10, %11 : vector<4x32x3xf32>
    %cst_8 = arith.constant 5.000000e-01 : f32
    %13 = vector.broadcast %cst_8 : f32 to vector<4x32x3xf32>
    %14 = arith.mulf %13, %12 : vector<4x32x3xf32>
    %c0_9 = arith.constant 0 : index
    %c0_10 = arith.constant 0 : index
    %c0_11 = arith.constant 0 : index
    %15 = vector.load %arg4[%c0_9, %c0_10, %c0_11] : memref<1x1x3xf32, #tpu.memory_space<vmem>>, vector<1x1x3xf32>
    %16 = vector.broadcast %15 : vector<1x1x3xf32> to vector<4x32x3xf32>
    %17 = arith.mulf %14, %16 : vector<4x32x3xf32>
    %c0_12 = arith.constant 0 : index
    %c0_13 = arith.constant 0 : index
    %c0_14 = arith.constant 0 : index
    %18 = vector.load %arg5[%c0_12, %c0_13, %c0_14] : memref<4x32x3xf32, #tpu.memory_space<vmem>>, vector<4x32x3xf32>
    tpu.vector_store %arg5[%c0_12, %c0_13, %c0_14], %17 {strides = array<i32>} : memref<4x32x3xf32, #tpu.memory_space<vmem>>, vector<4x32x3xf32>,
    return
  }
  func.func @transform_0(%arg0: i32) -> (i32, i32) {
    %c0_i32 = arith.constant 0 : i32
    %c0_i32_0 = arith.constant 0 : i32
    %c0_i32_1 = arith.constant 0 : i32
    return %c0_i32, %c0_i32_0 : i32, i32
  }
  func.func @transform_1(%arg0: i32) -> (i32, i32) {
    %c0_i32 = arith.constant 0 : i32
    %c0_i32_0 = arith.constant 0 : i32
    %c0_i32_1 = arith.constant 0 : i32
    return %c0_i32, %c0_i32_0 : i32, i32
  }
  func.func @transform_2(%arg0: i32) -> (i32, i32, i32) {
    %c0_i32 = arith.constant 0 : i32
    %c0_i32_0 = arith.constant 0 : i32
    %c0_i32_1 = arith.constant 0 : i32
    %c0_i32_2 = arith.constant 0 : i32
    return %c0_i32, %c0_i32_0, %c0_i32_1 : i32, i32, i32
  }
  func.func @transform_3(%arg0: i32) -> (i32, i32, i32) {
    %c0_i32 = arith.constant 0 : i32
    %c0_i32_0 = arith.constant 0 : i32
    %c0_i32_1 = arith.constant 0 : i32
    %c0_i32_2 = arith.constant 0 : i32
    return %c0_i32, %c0_i32_0, %c0_i32_1 : i32, i32, i32
  }
  func.func @transform_4(%arg0: i32) -> (i32, i32, i32) {
    %c0_i32 = arith.constant 0 : i32
    %c0_i32_0 = arith.constant 0 : i32
    %c0_i32_1 = arith.constant 0 : i32
    %c0_i32_2 = arith.constant 0 : i32
    return %c0_i32, %c0_i32_0, %c0_i32_1 : i32, i32, i32
  }
}

</mosaic_0001>

<bundles_post_ra>
// kernel: tpu_custom_call.1
= control target key start
LH: loop header
LB: loop body
LE: loop exit
PB: predicated region body
PF: predicated region fallthrough
CT: control target
= control target key end

     0   :  { %vm23_vm0 = vcmask 130048   ;;  %vm181_vm1 = vcmask 23552   ;;  %s389_s1 = inlined_call_operand.vmem [shape: f32[16,3], index: 1, kind: input, shape index: {}]   ;;  %s390_s0 = inlined_call_operand.vmem [shape: f32[32,16], index: 0, kind: input, shape index: {}]   ;;  %s391_s2 = inlined_call_operand.vmem [shape: f32[4,1,3], index: 2, kind: input, shape index: {}]   ;;  %s392_s3 = inlined_call_operand.vmem [shape: f32[1,1,3], index: 3, kind: input, shape index: {}]   ;;  %s393_s4 = inlined_call_operand.vmem [shape: f32[4,32,3], index: 4, kind: output, shape index: {}]  }
   0x1   :  { %v22_v0 = vld [vmem:[%s389_s1 + $0x8] sm:$0xff]  ;;  %v21_v1 = vld [vmem:[%s389_s1] sm:$0xff]  ;;  %v19_v2 = vld [vmem:[%s390_s0 + $0x10] sm:$0xff] }
   0x2   :  { %207 = vmatpush.msra.mxu2 %v22_v0  ;;  %208 = vmatpush.msra.mxu3 %v22_v0  ;;  %v20_v3 = vld [vmem:[%s390_s0 + $0x18] sm:$0xff]  ;;  %v17_v4 = vld [vmem:[%s390_s0] sm:$0xff]  ;;  %v18_v5 = vld [vmem:[%s390_s0 + $0x8] sm:$0xff] }
   0x3   :  { %50 = vmatpush.msra.mxu0 %v22_v0  ;;  %206 = vmatpush.msra.mxu1 %v22_v0  ;;  %v212_v6 = vld [vmem:[%s391_s2] ss:$0 sm:$0xff]  ;;  %v213_v7 = vld [vmem:[%s391_s2 + $0x1] ss:$0 sm:$0xff]  ;;  %v214_v8 = vld [vmem:[%s391_s2 + $0x2] ss:$0 sm:$0xff] }
   0x4   :  { %210 = vmatpush.msra.mxu2 %v21_v1  ;;  %211 = vmatpush.msra.mxu3 %v21_v1  ;;  %v215_v9 = vld [vmem:[%s391_s2 + $0x3] ss:$0 sm:$0xff]  ;;  %v307_v44 = vld [vmem:[%s392_s3] ss:$0 sm:$0xff] }
   0x5   :  { %204 = vmatmul.msk.f32.vlgmr.msra.gmra.mxu2 %vm23_vm0, %v19_v2  ;;  %205 = vmatmul.msk.f32.vlgmr.msra.gmra.mxu3 %vm23_vm0, %v20_v3 }
   0x6   :  { %51 = vmatpush.msra.mxu0 %v21_v1  ;;  %209 = vmatpush.msra.mxu1 %v21_v1 }
   0x7   :  { %202 = vmatmul.msk.f32.vlgmr.msra.gmra.mxu0 %vm23_vm0, %v17_v4  ;;  %203 = vmatmul.msk.f32.vlgmr.msra.gmra.mxu1 %vm23_vm0, %v18_v5 }
  0x84   :  { %v53_v10 = vpop.f32.mrf.mxu0  ;;  %v56_v11 = vpop.f32.mrf.mxu1 }
  0x85   :  { %v81_v12 = vadd.f32 %v212_v6, %v53_v10  ;;  %v85_v13 = vadd.f32 %v213_v7, %v53_v10  ;;  %v89_v14 = vadd.f32 %v214_v8, %v53_v10  ;;  %v93_v15 = vadd.f32 %v215_v9, %v53_v10 }
  0x86   :  { %v82_v16 = vadd.f32 %v212_v6, %v56_v11  ;;  %v86_v17 = vadd.f32 %v213_v7, %v56_v11  ;;  %v90_v21 = vadd.f32 %v214_v8, %v56_v11  ;;  %v94_v23 = vadd.f32 %v215_v9, %v56_v11 }
  0x87   :  { %v97_v18 = vmul.f32 0.5, %v81_v12  ;;  %v101_v19 = vmul.f32 0.5, %v85_v13  ;;  %v105_v20 = vmul.f32 0.5, %v89_v14  ;;  %v109_v22 = vmul.f32 0.5, %v93_v15 }
  0x88   :  { %v59_v24 = vpop.f32.mrf.mxu2  ;;  %v98_v25 = vmul.f32 0.5, %v82_v16  ;;  %v102_v27 = vmul.f32 0.5, %v86_v17  ;;  %v62_v29 = vpop.f32.mrf.mxu3  ;;  %v106_v30 = vmul.f32 0.5, %v90_v21  ;;  %v110_v32 = vmul.f32 0.5, %v94_v23 }
  0x89   :  { %217 = vtanh.f32 %v97_v18  ;;  %v83_v26 = vadd.f32 %v212_v6, %v59_v24  ;;  %v87_v28 = vadd.f32 %v213_v7, %v59_v24  ;;  %v91_v31 = vadd.f32 %v214_v8, %v59_v24 }
  0x8a   :  { %219 = vtanh.f32 %v101_v19  ;;  %v95_v33 = vadd.f32 %v215_v9, %v59_v24  ;;  %v84_v35 = vadd.f32 %v212_v6, %v62_v29  ;;  %v88_v36 = vadd.f32 %v213_v7, %v62_v29 }
  0x8b   :  { %221 = vtanh.f32 %v105_v20  ;;  %v99_v34 = vmul.f32 0.5, %v83_v26  ;;  %v103_v37 = vmul.f32 0.5, %v87_v28  ;;  %v92_v38 = vadd.f32 %v214_v8, %v62_v29 }
  0x8c   :  { %223 = vtanh.f32 %v109_v22  ;;  %v107_v40 = vmul.f32 0.5, %v91_v31  ;;  %v96_v41 = vadd.f32 %v215_v9, %v62_v29  ;;  %v111_v45 = vmul.f32 0.5, %v95_v33 }
  0x8d   :  { %225 = vtanh.f32 %v98_v25  ;;  %v100_v48 = vmul.f32 0.5, %v84_v35  ;;  %v104_v49 = vmul.f32 0.5, %v88_v36  ;;  %v108_v53 = vmul.f32 0.5, %v92_v38 }
  0x8e   :  { %227 = vtanh.f32 %v102_v27  ;;  %v112_v57 = vmul.f32 0.5, %v96_v41 }
  0x8f   :  { %v218_v39 = vpop.eup %217  ;;  %229 = vtanh.f32 %v106_v30 }
  0x90   :  { %v220_v42 = vpop.eup %219  ;;  %v129_v43 = vadd.f32 1.0, %v218_v39  ;;  %231 = vtanh.f32 %v110_v32 }
  0x91   :  { %v222_v46 = vpop.eup %221  ;;  %v133_v47 = vadd.f32 1.0, %v220_v42  ;;  %233 = vtanh.f32 %v99_v34 }
  0x92   :  { %v224_v50 = vpop.eup %223  ;;  %v137_v51 = vadd.f32 1.0, %v222_v46  ;;  %v145_v52 = vmul.f32 0.5, %v129_v43  ;;  %235 = vtanh.f32 %v103_v37 }
  0x93   :  { %v226_v54 = vpop.eup %225  ;;  %v141_v55 = vadd.f32 1.0, %v224_v50  ;;  %v149_v56 = vmul.f32 0.5, %v133_v47  ;;  %237 = vtanh.f32 %v107_v40 }
  0x94   :  { %v228_v58 = vpop.eup %227  ;;  %v153_v59 = vmul.f32 0.5, %v137_v51  ;;  %v165_v60 = vmul.f32 %v307_v44, %v145_v52  ;;  %v130_v61 = vadd.f32 1.0, %v226_v54  ;;  %239 = vtanh.f32 %v111_v45 }
  0x95   :  { %v230_v62 = vpop.eup %229  ;;  %v157_v63 = vmul.f32 0.5, %v141_v55  ;;  %v169_v0 = vmul.f32 %v307_v44, %v149_v56  ;;  %v134_v1 = vadd.f32 1.0, %v228_v58  ;;  %241 = vtanh.f32 %v100_v48 }
  0x96   :  { %v232_v2 = vpop.eup %231  ;;  %v173_v3 = vmul.f32 %v307_v44, %v153_v59  ;;  %182 = vst.msk [vmem:[%s393_s4] sm:$0xff] %vm181_vm1, %v165_v60  ;;  %v138_v4 = vadd.f32 1.0, %v230_v62  ;;  %v146_v5 = vmul.f32 0.5, %v130_v61  ;;  %243 = vtanh.f32 %v104_v49 }
  0x97   :  { %v234_v6 = vpop.eup %233  ;;  %v177_v7 = vmul.f32 %v307_v44, %v157_v63  ;;  %186 = vst.msk [vmem:[%s393_s4 + $0x20] sm:$0xff] %vm181_vm1, %v169_v0  ;;  %v142_v8 = vadd.f32 1.0, %v232_v2  ;;  %v150_v9 = vmul.f32 0.5, %v134_v1  ;;  %245 = vtanh.f32 %v108_v53 }
  0x98   :  { %v236_v10 = vpop.eup %235  ;;  %190 = vst.msk [vmem:[%s393_s4 + $0x40] sm:$0xff] %vm181_vm1, %v173_v3  ;;  %v154_v11 = vmul.f32 0.5, %v138_v4  ;;  %v166_v12 = vmul.f32 %v307_v44, %v146_v5  ;;  %v131_v13 = vadd.f32 1.0, %v234_v6  ;;  %247 = vtanh.f32 %v112_v57 }
  0x99   :  { %v238_v14 = vpop.eup %237  ;;  %194 = vst.msk [vmem:[%s393_s4 + $0x60] sm:$0xff] %vm181_vm1, %v177_v7  ;;  %v158_v15 = vmul.f32 0.5, %v142_v8  ;;  %v170_v16 = vmul.f32 %v307_v44, %v150_v9  ;;  %v135_v17 = vadd.f32 1.0, %v236_v10 }
  0x9a   :  { %v240_v18 = vpop.eup %239  ;;  %v174_v19 = vmul.f32 %v307_v44, %v154_v11  ;;  %183 = vst.msk [vmem:[%s393_s4 + $0x8] sm:$0xff] %vm181_vm1, %v166_v12  ;;  %v139_v20 = vadd.f32 1.0, %v238_v14  ;;  %v147_v21 = vmul.f32 0.5, %v131_v13 }
  0x9b   :  { %v242_v22 = vpop.eup %241  ;;  %v178_v23 = vmul.f32 %v307_v44, %v158_v15  ;;  %187 = vst.msk [vmem:[%s393_s4 + $0x28] sm:$0xff] %vm181_vm1, %v170_v16  ;;  %v143_v24 = vadd.f32 1.0, %v240_v18  ;;  %v151_v25 = vmul.f32 0.5, %v135_v17 }
  0x9c   :  { %v244_v26 = vpop.eup %243  ;;  %191 = vst.msk [vmem:[%s393_s4 + $0x48] sm:$0xff] %vm181_vm1, %v174_v19  ;;  %v155_v27 = vmul.f32 0.5, %v139_v20  ;;  %v167_v28 = vmul.f32 %v307_v44, %v147_v21  ;;  %v132_v29 = vadd.f32 1.0, %v242_v22 }
  0x9d   :  { %v246_v30 = vpop.eup %245  ;;  %195 = vst.msk [vmem:[%s393_s4 + $0x68] sm:$0xff] %vm181_vm1, %v178_v23  ;;  %v159_v31 = vmul.f32 0.5, %v143_v24  ;;  %v171_v32 = vmul.f32 %v307_v44, %v151_v25  ;;  %v136_v33 = vadd.f32 1.0, %v244_v26 }
  0x9e   :  { %v248_v34 = vpop.eup %247  ;;  %v175_v35 = vmul.f32 %v307_v44, %v155_v27  ;;  %184 = vst.msk [vmem:[%s393_s4 + $0x10] sm:$0xff] %vm181_vm1, %v167_v28  ;;  %v140_v36 = vadd.f32 1.0, %v246_v30  ;;  %v148_v37 = vmul.f32 0.5, %v132_v29 }
  0x9f   :  { %v179_v38 = vmul.f32 %v307_v44, %v159_v31  ;;  %188 = vst.msk [vmem:[%s393_s4 + $0x30] sm:$0xff] %vm181_vm1, %v171_v32  ;;  %v144_v39 = vadd.f32 1.0, %v248_v34  ;;  %v152_v40 = vmul.f32 0.5, %v136_v33 }
  0xa0   :  { %192 = vst.msk [vmem:[%s393_s4 + $0x50] sm:$0xff] %vm181_vm1, %v175_v35  ;;  %v156_v41 = vmul.f32 0.5, %v140_v36  ;;  %v168_v42 = vmul.f32 %v307_v44, %v148_v37 }
  0xa1   :  { %196 = vst.msk [vmem:[%s393_s4 + $0x70] sm:$0xff] %vm181_vm1, %v179_v38  ;;  %v160_v43 = vmul.f32 0.5, %v144_v39  ;;  %v172_v45 = vmul.f32 %v307_v44, %v152_v40 }
  0xa2   :  { %v176_v46 = vmul.f32 %v307_v44, %v156_v41  ;;  %185 = vst.msk [vmem:[%s393_s4 + $0x18] sm:$0xff] %vm181_vm1, %v168_v42 }
  0xa3   :  { %v180_v47 = vmul.f32 %v307_v44, %v160_v43  ;;  %189 = vst.msk [vmem:[%s393_s4 + $0x38] sm:$0xff] %vm181_vm1, %v172_v45 }
  0xa4   :  { %193 = vst.msk [vmem:[%s393_s4 + $0x58] sm:$0xff] %vm181_vm1, %v176_v46 }
  0xa5   :  { %197 = vst.msk [vmem:[%s393_s4 + $0x78] sm:$0xff] %vm181_vm1, %v180_v47 }

</bundles_post_ra>
